<compile_context>
chip_gen: v7x
topology: tpu7x:2x2x1
jax: 0.10.0
libtpu: 0.0.40
codegen_flags: <defaults>
</compile_context>

<pallas_src>
import functools

import jax
import jax.numpy as jnp
from jax.experimental import pallas as pl
from jax.experimental.pallas import tpu as pltpu


def _round_up(n, m):
    return ((n + m - 1) // m) * m


def _vae_kernel(
    x_ref,       # (BT, D)   flattened image tile (matmul dtype, e.g. bf16)
    eps_ref,     # (BT, L)   standard-normal noise (f32)
    w1_ref,      # (H, D)    encoder fc1 weight
    b1_ref,      # (1, H)    encoder fc1 bias (f32)
    wmulv_ref,   # (2L, H)   fused [fc_mu; fc_logvar] weight
    bmulv_ref,   # (1, 2L)   fused [fc_mu; fc_logvar] bias (f32)
    wd1_ref,     # (H, L)    decoder fc1 weight
    bd1_ref,     # (1, H)    decoder fc1 bias (f32)
    wd2_ref,     # (D, H)    decoder fc2 weight
    bd2_ref,     # (1, D)    decoder fc2 bias (f32)
    xrec_ref,    # out: (BT, D)   reconstruction (flat)
    mulv_ref,    # out: (BT, 2L)  [mu | logvar]
    *,
    latent_size,
):
    mm_dtype = w1_ref.dtype  # bf16 (or f32 if bf16 disabled)

    def linear(a, w_ref, b_ref):
        # y = a @ W.T + b  (PyTorch nn.Linear; W is (out, in)).
        # Contract the last axis of both operands: the MXU consumes W directly,
        # no in-kernel XLU transpose / extra VMEM copy.
        y = jax.lax.dot_general(
            a.astype(mm_dtype),
            w_ref[...],
            dimension_numbers=(((1,), (1,)), ((), ())),
            preferred_element_type=jnp.float32,
        )
        return y + b_ref[...]

    # ----- Encoder -----
    h = jnp.maximum(linear(x_ref[...], w1_ref, b1_ref), 0.0)          # (BT, H) f32
    mulv = linear(h, wmulv_ref, bmulv_ref)                            # (BT, 2L) f32
    mu = mulv[:, :latent_size]
    logvar = mulv[:, latent_size:]

    # ----- Reparameterize: z = mu + eps * exp(0.5 * logvar) (all f32) -----
    std = jnp.exp(0.5 * logvar)
    z = mu + eps_ref[...] * std

    # ----- Decoder -----
    hd = jnp.maximum(linear(z, wd1_ref, bd1_ref), 0.0)                # (BT, H) f32
    logits = linear(hd, wd2_ref, bd2_ref)                             # (BT, D) f32
    # sigmoid(x) = 1 / (1 + exp(-x)); exp + approx reciprocal both hit the EUP.
    xrec = pl.reciprocal(1.0 + jnp.exp(-logits), approx=True)

    xrec_ref[...] = xrec.astype(xrec_ref.dtype)
    mulv_ref[...] = mulv.astype(mulv_ref.dtype)


def vae_forward(
    x_nchw,
    eps,
    params,
    *,
    image_height,
    image_width,
    use_bf16_matmul=True,
    batch_block=128,
):
    """Fused VAE forward (Pallas TPU).

    Args:
      x_nchw: (B, 1, H, W) input, NCHW like PyTorch.
      eps:    (B, latent_size) standard-normal noise (the torch.randn_like draw).
      params: dict of weights/biases in PyTorch Linear convention.

    Returns:
      (x_recon (B, 1, H, W), mu (B, L), logvar (B, L)), all float32.
    """
    B = x_nchw.shape[0]
    D = image_height * image_width
    L = params["wmu"].shape[0]

    x_flat = x_nchw.reshape(B, D)  # same as torch .view(-1, H*W)

    # Fuse the two latent heads into one matmul: (2L, H) weight, (1, 2L) bias.
    wmulv = jnp.concatenate([params["wmu"], params["wlv"]], axis=0)
    bmulv = jnp.concatenate([params["bmu"], params["blv"]], axis=1)

    mat_dtype = jnp.bfloat16 if use_bf16_matmul else jnp.float32
    x_mat = x_flat.astype(mat_dtype)
    w1 = params["w1"].astype(mat_dtype)
    wmulv = wmulv.astype(mat_dtype)
    wd1 = params["wd1"].astype(mat_dtype)
    wd2 = params["wd2"].astype(mat_dtype)

    # Pad batch to a sublane-friendly tile and tile the grid over it.
    bt = _round_up(min(batch_block, _round_up(B, 8)), 8)
    b_pad = _round_up(B, bt)
    if b_pad != B:
        x_mat = jnp.pad(x_mat, ((0, b_pad - B), (0, 0)))
        eps_p = jnp.pad(eps, ((0, b_pad - B), (0, 0)))
    else:
        eps_p = eps
    grid = (b_pad // bt,)

    def _resident(a):
        # Full-array block, constant index_map: stays VMEM-resident across grid.
        nd = a.ndim
        return pl.BlockSpec(a.shape, lambda i, _nd=nd: (0,) * _nd)

    in_arrays = (
        x_mat, eps_p,
        w1, params["b1"],
        wmulv, bmulv,
        wd1, params["bd1"],
        wd2, params["bd2"],
    )
    in_specs = [
        pl.BlockSpec((bt, D), lambda i: (i, 0)),
        pl.BlockSpec((bt, L), lambda i: (i, 0)),
        _resident(w1), _resident(params["b1"]),
        _resident(wmulv), _resident(bmulv),
        _resident(wd1), _resident(params["bd1"]),
        _resident(wd2), _resident(params["bd2"]),
    ]
    out_shapes = (
        jax.ShapeDtypeStruct((b_pad, D), jnp.float32),      # x_recon (flat)
        jax.ShapeDtypeStruct((b_pad, 2 * L), jnp.float32),  # [mu | logvar]
    )
    out_specs = (
        pl.BlockSpec((bt, D), lambda i: (i, 0)),
        pl.BlockSpec((bt, 2 * L), lambda i: (i, 0)),
    )

    kernel = functools.partial(_vae_kernel, latent_size=L)

    xrec_flat, mulv = pl.pallas_call(
        kernel,
        out_shape=out_shapes,
        grid=grid,
        in_specs=in_specs,
        out_specs=out_specs,
        compiler_params=pltpu.CompilerParams(
            dimension_semantics=("parallel",),
        ),
    )(*in_arrays)

    # Drop batch padding, split the fused latent slab, restore NCHW.
    x_recon = xrec_flat[:B].reshape(B, 1, image_height, image_width)
    mu = mulv[:B, :L]
    logvar = mulv[:B, L:]
    return x_recon, mu, logvar


def init_params(key, image_height, image_width, latent_size, hidden_size):
    """Deterministic init mimicking nn.Linear's U(-1/sqrt(fan_in), 1/sqrt(fan_in))."""
    D = image_height * image_width
    H = hidden_size
    L = latent_size

    def linear(k, out_f, in_f):
        kw, kb = jax.random.split(k)
        bound = 1.0 / jnp.sqrt(in_f)
        w = jax.random.uniform(kw, (out_f, in_f), jnp.float32, -bound, bound)
        b = jax.random.uniform(kb, (1, out_f), jnp.float32, -bound, bound)
        return w, b

    keys = jax.random.split(key, 5)
    w1, b1 = linear(keys[0], H, D)       # encoder fc1
    wmu, bmu = linear(keys[1], L, H)     # encoder fc_mu
    wlv, blv = linear(keys[2], L, H)     # encoder fc_logvar
    wd1, bd1 = linear(keys[3], H, L)     # decoder fc1
    wd2, bd2 = linear(keys[4], D, H)     # decoder fc2

    return {
        "w1": w1, "b1": b1,
        "wmu": wmu, "bmu": bmu,
        "wlv": wlv, "blv": blv,
        "wd1": wd1, "bd1": bd1,
        "wd2": wd2, "bd2": bd2,
    }


if __name__ == "__main__":
    image_height = 16
    image_width = 16
    latent_size = 8
    hidden_size = 32
    batch = 2

    key = jax.random.PRNGKey(0)
    k_x, k_eps, k_params = jax.random.split(key, 3)

    # Input image in [0, 1), NCHW.
    x = jax.random.uniform(k_x, (batch, 1, image_height, image_width), jnp.float32)
    # Noise for the reparameterization trick (corresponds to torch.randn_like(std)).
    eps = jax.random.normal(k_eps, (batch, latent_size), jnp.float32)

    params = init_params(k_params, image_height, image_width, latent_size, hidden_size)

    fwd = jax.jit(
        functools.partial(vae_forward, image_height=image_height, image_width=image_width)
    )
    x_recon, mu, logvar = fwd(x, eps, params)
    jax.block_until_ready((x_recon, mu, logvar))

    # Full-f32 reference (plain JAX, same math as the PyTorch module).
    x_flat = x.reshape(batch, -1)
    h = jnp.maximum(x_flat @ params["w1"].T + params["b1"], 0.0)
    mu_ref = h @ params["wmu"].T + params["bmu"]
    lv_ref = h @ params["wlv"].T + params["blv"]
    z = mu_ref + eps * jnp.exp(0.5 * lv_ref)
    hd = jnp.maximum(z @ params["wd1"].T + params["bd1"], 0.0)
    xr_ref = jax.nn.sigmoid(hd @ params["wd2"].T + params["bd2"]).reshape(
        batch, 1, image_height, image_width
    )

    assert x_recon.shape == (batch, 1, image_height, image_width)
    assert mu.shape == (batch, latent_size) and logvar.shape == (batch, latent_size)
    # Kernel uses bf16 MXU inputs (f32 accumulate) + approx-reciprocal sigmoid,
    # so compare against the f32 reference with a bf16-appropriate tolerance.
    assert float(jnp.max(jnp.abs(x_recon - xr_ref))) < 5e-2
    assert float(jnp.max(jnp.abs(mu - mu_ref))) < 5e-2
    assert float(jnp.max(jnp.abs(logvar - lv_ref))) < 5e-2

    print("KERNEL_OK")
</pallas_src>

<mosaic_0001>
module attributes {stable_mosaic.version = 11 : i64} {
  func.func @_vae_kernel(%arg0: i32, %arg1: memref<8x256xbf16, #tpu.memory_space<vmem>>, %arg2: memref<8x8xf32, #tpu.memory_space<vmem>>, %arg3: memref<32x256xbf16, #tpu.memory_space<vmem>>, %arg4: memref<1x32xf32, #tpu.memory_space<vmem>>, %arg5: memref<16x32xbf16, #tpu.memory_space<vmem>>, %arg6: memref<1x16xf32, #tpu.memory_space<vmem>>, %arg7: memref<32x8xbf16, #tpu.memory_space<vmem>>, %arg8: memref<1x32xf32, #tpu.memory_space<vmem>>, %arg9: memref<256x32xbf16, #tpu.memory_space<vmem>>, %arg10: memref<1x256xf32, #tpu.memory_space<vmem>>, %arg11: memref<8x256xf32, #tpu.memory_space<vmem>>, %arg12: memref<8x16xf32, #tpu.memory_space<vmem>>) attributes {dimension_semantics = [#tpu.dimension_semantics<parallel>], iteration_bounds = array<i64: 1>, scalar_prefetch = 0 : i64, scratch_operands = 0 : i64, tpu.core_type = #tpu.core_type<tc>, window_params = [{transform_indices = @transform_0, window_bounds = array<i64: 8, 256>}, {transform_indices = @transform_1, window_bounds = array<i64: 8, 8>}, {pipeline_mode = #tpu.pipeline_mode<synchronous>, transform_indices = @transform_2, window_bounds = array<i64: 32, 256>}, {pipeline_mode = #tpu.pipeline_mode<synchronous>, transform_indices = @transform_3, window_bounds = array<i64: 1, 32>}, {pipeline_mode = #tpu.pipeline_mode<synchronous>, transform_indices = @transform_4, window_bounds = array<i64: 16, 32>}, {pipeline_mode = #tpu.pipeline_mode<synchronous>, transform_indices = @transform_5, window_bounds = array<i64: 1, 16>}, {pipeline_mode = #tpu.pipeline_mode<synchronous>, transform_indices = @transform_6, window_bounds = array<i64: 32, 8>}, {pipeline_mode = #tpu.pipeline_mode<synchronous>, transform_indices = @transform_7, window_bounds = array<i64: 1, 32>}, {pipeline_mode = #tpu.pipeline_mode<synchronous>, transform_indices = @transform_8, window_bounds = array<i64: 256, 32>}, {pipeline_mode = #tpu.pipeline_mode<synchronous>, transform_indices = @transform_9, window_bounds = array<i64: 1, 256>}, {transform_indices = @transform_10, window_bounds = array<i64: 8, 256>}, {transform_indices = @transform_11, window_bounds = array<i64: 8, 16>}]} {
    %c0 = arith.constant 0 : index
    %c0_0 = arith.constant 0 : index
    %0 = vector.load %arg1[%c0, %c0_0] : memref<8x256xbf16, #tpu.memory_space<vmem>>, vector<8x256xbf16>
    %c0_1 = arith.constant 0 : index
    %c0_2 = arith.constant 0 : index
    %1 = vector.load %arg3[%c0_1, %c0_2] : memref<32x256xbf16, #tpu.memory_space<vmem>>, vector<32x256xbf16>
    %cst = arith.constant dense<0.000000e+00> : vector<8x32xf32>
    %2 = tpu.matmul %0, %1, %cst {dimension_numbers = #tpu.dot_dimension_numbers<[1], [1], [0], [0], [0, 0, 1, 0], [], []>} : vector<8x256xbf16>, vector<32x256xbf16>, vector<8x32xf32> -> vector<8x32xf32>
    %c0_3 = arith.constant 0 : index
    %c0_4 = arith.constant 0 : index
    %3 = vector.load %arg4[%c0_3, %c0_4] : memref<1x32xf32, #tpu.memory_space<vmem>>, vector<1x32xf32>
    %4 = vector.broadcast %3 : vector<1x32xf32> to vector<8x32xf32>
    %5 = arith.addf %2, %4 : vector<8x32xf32>
    %cst_5 = arith.constant 0.000000e+00 : f32
    %6 = vector.broadcast %cst_5 : f32 to vector<8x32xf32>
    %7 = arith.maximumf %5, %6 : vector<8x32xf32>
    %8 = arith.truncf %7 : vector<8x32xf32> to vector<8x32xbf16>
    %c0_6 = arith.constant 0 : index
    %c0_7 = arith.constant 0 : index
    %9 = vector.load %arg5[%c0_6, %c0_7] : memref<16x32xbf16, #tpu.memory_space<vmem>>, vector<16x32xbf16>
    %cst_8 = arith.constant dense<0.000000e+00> : vector<8x16xf32>
    %10 = tpu.matmul %8, %9, %cst_8 {dimension_numbers = #tpu.dot_dimension_numbers<[1], [1], [0], [0], [0, 0, 1, 0], [], []>} : vector<8x32xbf16>, vector<16x32xbf16>, vector<8x16xf32> -> vector<8x16xf32>
    %c0_9 = arith.constant 0 : index
    %c0_10 = arith.constant 0 : index
    %11 = vector.load %arg6[%c0_9, %c0_10] : memref<1x16xf32, #tpu.memory_space<vmem>>, vector<1x16xf32>
    %12 = vector.broadcast %11 : vector<1x16xf32> to vector<8x16xf32>
    %13 = arith.addf %10, %12 : vector<8x16xf32>
    %14 = vector.extract_strided_slice %13 {offsets = [0, 0], sizes = [8, 8], strides = [1, 1]} : vector<8x16xf32> to vector<8x8xf32>
    %15 = vector.extract_strided_slice %13 {offsets = [0, 8], sizes = [8, 8], strides = [1, 1]} : vector<8x16xf32> to vector<8x8xf32>
    %cst_11 = arith.constant 5.000000e-01 : f32
    %16 = vector.broadcast %cst_11 : f32 to vector<8x8xf32>
    %17 = arith.mulf %16, %15 : vector<8x8xf32>
    %18 = math.exp %17 : vector<8x8xf32>
    %c0_12 = arith.constant 0 : index
    %c0_13 = arith.constant 0 : index
    %19 = vector.load %arg2[%c0_12, %c0_13] : memref<8x8xf32, #tpu.memory_space<vmem>>, vector<8x8xf32>
    %20 = arith.mulf %19, %18 : vector<8x8xf32>
    %21 = arith.addf %14, %20 : vector<8x8xf32>
    %22 = arith.truncf %21 : vector<8x8xf32> to vector<8x8xbf16>
    %c0_14 = arith.constant 0 : index
    %c0_15 = arith.constant 0 : index
    %23 = vector.load %arg7[%c0_14, %c0_15] : memref<32x8xbf16, #tpu.memory_space<vmem>>, vector<32x8xbf16>
    %cst_16 = arith.constant dense<0.000000e+00> : vector<8x32xf32>
    %24 = tpu.matmul %22, %23, %cst_16 {dimension_numbers = #tpu.dot_dimension_numbers<[1], [1], [0], [0], [0, 0, 1, 0], [], []>} : vector<8x8xbf16>, vector<32x8xbf16>, vector<8x32xf32> -> vector<8x32xf32>
    %c0_17 = arith.constant 0 : index
    %c0_18 = arith.constant 0 : index
    %25 = vector.load %arg8[%c0_17, %c0_18] : memref<1x32xf32, #tpu.memory_space<vmem>>, vector<1x32xf32>
    %26 = vector.broadcast %25 : vector<1x32xf32> to vector<8x32xf32>
    %27 = arith.addf %24, %26 : vector<8x32xf32>
    %cst_19 = arith.constant 0.000000e+00 : f32
    %28 = vector.broadcast %cst_19 : f32 to vector<8x32xf32>
    %29 = arith.maximumf %27, %28 : vector<8x32xf32>
    %30 = arith.truncf %29 : vector<8x32xf32> to vector<8x32xbf16>
    %c0_20 = arith.constant 0 : index
    %c0_21 = arith.constant 0 : index
    %31 = vector.load %arg9[%c0_20, %c0_21] : memref<256x32xbf16, #tpu.memory_space<vmem>>, vector<256x32xbf16>
    %cst_22 = arith.constant dense<0.000000e+00> : vector<8x256xf32>
    %32 = tpu.matmul %30, %31, %cst_22 {dimension_numbers = #tpu.dot_dimension_numbers<[1], [1], [0], [0], [0, 0, 1, 0], [], []>} : vector<8x32xbf16>, vector<256x32xbf16>, vector<8x256xf32> -> vector<8x256xf32>
    %c0_23 = arith.constant 0 : index
    %c0_24 = arith.constant 0 : index
    %33 = vector.load %arg10[%c0_23, %c0_24] : memref<1x256xf32, #tpu.memory_space<vmem>>, vector<1x256xf32>
    %34 = vector.broadcast %33 : vector<1x256xf32> to vector<8x256xf32>
    %35 = arith.addf %32, %34 : vector<8x256xf32>
    %cst_25 = arith.constant 0.000000e+00 : f32
    %36 = vector.broadcast %cst_25 : f32 to vector<8x256xf32>
    %37 = arith.subf %36, %35 : vector<8x256xf32>
    %38 = math.exp %37 : vector<8x256xf32>
    %cst_26 = arith.constant 1.000000e+00 : f32
    %39 = vector.broadcast %cst_26 : f32 to vector<8x256xf32>
    %40 = arith.addf %39, %38 : vector<8x256xf32>
    %41 = tpu.reciprocal %40 {approx = true} : vector<8x256xf32> -> vector<8x256xf32>
    %c0_27 = arith.constant 0 : index
    %c0_28 = arith.constant 0 : index
    %42 = vector.load %arg11[%c0_27, %c0_28] : memref<8x256xf32, #tpu.memory_space<vmem>>, vector<8x256xf32>
    tpu.vector_store %arg11[%c0_27, %c0_28], %41 {strides = array<i32>} : memref<8x256xf32, #tpu.memory_space<vmem>>, vector<8x256xf32>,
    %c0_29 = arith.constant 0 : index
    %c0_30 = arith.constant 0 : index
    %43 = vector.load %arg12[%c0_29, %c0_30] : memref<8x16xf32, #tpu.memory_space<vmem>>, vector<8x16xf32>
    tpu.vector_store %arg12[%c0_29, %c0_30], %13 {strides = array<i32>} : memref<8x16xf32, #tpu.memory_space<vmem>>, vector<8x16xf32>,
    return
  }
  func.func @transform_0(%arg0: i32) -> (i32, i32) {
    %c0_i32 = arith.constant 0 : i32
    %c0_i32_0 = arith.constant 0 : i32
    return %arg0, %c0_i32 : i32, i32
  }
  func.func @transform_1(%arg0: i32) -> (i32, i32) {
    %c0_i32 = arith.constant 0 : i32
    %c0_i32_0 = arith.constant 0 : i32
    return %arg0, %c0_i32 : i32, i32
  }
  func.func @transform_2(%arg0: i32) -> (i32, i32) {
    %c0_i32 = arith.constant 0 : i32
    %c0_i32_0 = arith.constant 0 : i32
    %c0_i32_1 = arith.constant 0 : i32
    return %c0_i32, %c0_i32_0 : i32, i32
  }
  func.func @transform_3(%arg0: i32) -> (i32, i32) {
    %c0_i32 = arith.constant 0 : i32
    %c0_i32_0 = arith.constant 0 : i32
    %c0_i32_1 = arith.constant 0 : i32
    return %c0_i32, %c0_i32_0 : i32, i32
  }
  func.func @transform_4(%arg0: i32) -> (i32, i32) {
    %c0_i32 = arith.constant 0 : i32
    %c0_i32_0 = arith.constant 0 : i32
    %c0_i32_1 = arith.constant 0 : i32
    return %c0_i32, %c0_i32_0 : i32, i32
  }
  func.func @transform_5(%arg0: i32) -> (i32, i32) {
    %c0_i32 = arith.constant 0 : i32
    %c0_i32_0 = arith.constant 0 : i32
    %c0_i32_1 = arith.constant 0 : i32
    return %c0_i32, %c0_i32_0 : i32, i32
  }
  func.func @transform_6(%arg0: i32) -> (i32, i32) {
    %c0_i32 = arith.constant 0 : i32
    %c0_i32_0 = arith.constant 0 : i32
    %c0_i32_1 = arith.constant 0 : i32
    return %c0_i32, %c0_i32_0 : i32, i32
  }
  func.func @transform_7(%arg0: i32) -> (i32, i32) {
    %c0_i32 = arith.constant 0 : i32
    %c0_i32_0 = arith.constant 0 : i32
    %c0_i32_1 = arith.constant 0 : i32
    return %c0_i32, %c0_i32_0 : i32, i32
  }
  func.func @transform_8(%arg0: i32) -> (i32, i32) {
    %c0_i32 = arith.constant 0 : i32
    %c0_i32_0 = arith.constant 0 : i32
    %c0_i32_1 = arith.constant 0 : i32
    return %c0_i32, %c0_i32_0 : i32, i32
  }
  func.func @transform_9(%arg0: i32) -> (i32, i32) {
    %c0_i32 = arith.constant 0 : i32
    %c0_i32_0 = arith.constant 0 : i32
    %c0_i32_1 = arith.constant 0 : i32
    return %c0_i32, %c0_i32_0 : i32, i32
  }
  func.func @transform_10(%arg0: i32) -> (i32, i32) {
    %c0_i32 = arith.constant 0 : i32
    %c0_i32_0 = arith.constant 0 : i32
    return %arg0, %c0_i32 : i32, i32
  }
  func.func @transform_11(%arg0: i32) -> (i32, i32) {
    %c0_i32 = arith.constant 0 : i32
    %c0_i32_0 = arith.constant 0 : i32
    return %arg0, %c0_i32 : i32, i32
  }
}

</mosaic_0001>

<bundles_post_ra>
// kernel: vae_forward.1
= control target key start
LH: loop header
LB: loop body
LE: loop exit
PB: predicated region body
PF: predicated region fallthrough
CT: control target
= control target key end

     0   :  { %v618_v6 = vmov 0.0   ;;  %vm133_vm0 = vcmask 261120   ;;  %vm619_vm1 = vmmov 0   ;;  %vm212_vm2 = vcmask 64512   ;;  %s620_s21 = smov 120   ;;  %s800_s2 = inlined_call_operand.vmem [shape: bf16[32,256], index: 2, kind: input, shape index: {}]   ;;  %s801_s0 = inlined_call_operand.vmem [shape: bf16[8,256], index: 0, kind: input, shape index: {}]   ;;  %s802_s4 = inlined_call_operand.vmem [shape: bf16[16,32], index: 4, kind: input, shape index: {}]   ;;  %s803_s3 = inlined_call_operand.vmem [shape: f32[1,32], index: 3, kind: input, shape index: {}]   ;;  %s804_s6 = inlined_call_operand.vmem [shape: bf16[32,8], index: 6, kind: input, shape index: {}]   ;;  %s805_s5 = inlined_call_operand.vmem [shape: f32[1,16], index: 5, kind: input, shape index: {}]   ;;  %s806_s11 = inlined_call_operand.vmem [shape: f32[8,16], index: 11, kind: output, shape index: {1}]   ;;  %s807_s8 = inlined_call_operand.vmem [shape: bf16[256,32], index: 8, kind: input, shape index: {}]   ;;  %s808_s1 = inlined_call_operand.vmem [shape: f32[8,8], index: 1, kind: input, shape index: {}]   ;;  %s809_s7 = inlined_call_operand.vmem [shape: f32[1,32], index: 7, kind: input, shape index: {}]   ;;  %s810_s9 = inlined_call_operand.vmem [shape: f32[1,256], index: 9, kind: input, shape index: {}]   ;;  %s811_s10 = inlined_call_operand.vmem [shape: f32[8,256], index: 10, kind: output, shape index: {0}]  }
   0x1   :  { %v581_v0 = vld [vmem:[%s800_s2 + $0x4] ss:$8 sps:$4 sm:$0xff]   ;;  %v583_v1 = vld [vmem:[%s800_s2] ss:$8 sps:$4 sm:$0xff]   ;;  %v584_v2 = vld [vmem:[%s800_s2 + $0x14] ss:$8 sps:$4 sm:$0xff]  }
   0x2   :  { %77 = vmatprep.subr.bf16.mxu1 %v581_v0  ;;  %v38_v3 = vld [vmem:[%s801_s0] sm:$0xff]  ;;  %v586_v5 = vld [vmem:[%s800_s2 + $0x10] ss:$8 sps:$4 sm:$0xff]   ;;  %vm492_vm3 = vcmask 130048   ;;  %v591_v24 = vld [vmem:[%s804_s6 + $0x8] sm:$0xff]  }
   0x3   :  { %78 = vmatpush1.bf16.xpose.msra.mxu1 %v583_v1  ;;  %v504_v4 = vcombine.high %v38_v3, %v38_v3  ;;  %v589_v7 = vld [vmem:[%s802_s4] sm:$0xff]   ;;  %v503_v8 = vcombine.low %v38_v3, %v38_v3  ;;  %v220_v28 = vsel %vm212_vm2, %v591_v24, 0  ;;  %v594_v32 = vld [vmem:[%s807_s8 + $0x48] sm:$0xff]   ;;  %v596_v37 = vld [vmem:[%s807_s8 + $0x50] sm:$0xff]  }
   0x4   :  { %79 = vmatprep.subr.bf16.mxu1 %v584_v2  ;;  %v138_v9 = vsel %vm133_vm0, %v589_v7, 0  ;;  %v502_v10 = vld [vmem:[%s803_s3] ss:$0 sm:$0xff]  ;;  %v595_v35 = vld [vmem:[%s807_s8 + $0x8] sm:$0xff]   ;;  %v597_v38 = vld [vmem:[%s807_s8 + $0x10] sm:$0xff]  }
   0x5   :  { %109 = vmatprep.mubr.bf16.mxu1 %v504_v4  ;;  %v590_v18 = vld [vmem:[%s804_s6] sm:$0xff]   ;;  %v395_v36 = vsel %vm133_vm0, %v595_v35, 0  ;;  %v398_v39 = vsel %vm133_vm0, %v597_v38, 0  ;;  %v598_v40 = vld [vmem:[%s807_s8 + $0x58] sm:$0xff]   ;;  %v602_v46 = vld [vmem:[%s807_s8 + $0x68] sm:$0xff]   ;;  %v298_v4 = vlaneseq }
   0x6   :  { %v217_v19 = vsel %vm212_vm2, %v590_v18, 0  ;;  %v509_v20 = vld [vmem:[%s805_s5] ss:$0 sm:$0xff]  ;;  %v599_v41 = vld [vmem:[%s807_s8 + $0x18] sm:$0xff]   ;;  %v603_v47 = vld [vmem:[%s807_s8 + $0x28] sm:$0xff]  }
   0x7   :  { %v592_v30 = vld [vmem:[%s807_s8 + $0x40] sm:$0xff]   ;;  %v401_v42 = vsel %vm133_vm0, %v599_v41, 0  ;;  %v407_v48 = vsel %vm133_vm0, %v603_v47, 0  ;;  %v604_v49 = vld [vmem:[%s807_s8 + $0x70] sm:$0xff]   ;;  %v606_v57 = vld [vmem:[%s807_s8 + $0x78] sm:$0xff]  }
   0x8   :  { %v593_v31 = vld [vmem:[%s807_s8] sm:$0xff]   ;;  %570 = vmatprep.subr.msk.bf16.mxu0 %vm133_vm0, %v592_v30  ;;  %v605_v50 = vld [vmem:[%s807_s8 + $0x30] sm:$0xff]   ;;  %v607_v58 = vld [vmem:[%s807_s8 + $0x38] sm:$0xff]  }
   0x9   :  { %v392_v33 = vsel %vm133_vm0, %v593_v31, 0  ;;  %v600_v43 = vld [vmem:[%s807_s8 + $0x60] sm:$0xff]   ;;  %v410_v51 = vsel %vm133_vm0, %v605_v50, 0  ;;  %v413_v59 = vsel %vm133_vm0, %v607_v58, 0 }
   0xa   :  { %539 = vmatpush3.bf16.xpose.msra.mxu0 %v392_v33  ;;  %v601_v44 = vld [vmem:[%s807_s8 + $0x20] sm:$0xff]  }
   0xb   :  { %80 = vmatpush1.bf16.xpose.msra.mxu1 %v586_v5  ;;  %571 = vmatprep.subr.msk.bf16.mxu0 %vm133_vm0, %v594_v32  ;;  %v404_v45 = vsel %vm133_vm0, %v601_v44, 0  ;;  %v183_v52 = vld [vmem:[%s808_s1] sm:$0xff]  ;;  %v299_v5 = vshrl.u32 %v298_v4, 7 }
   0xc   :  { %556 = vmatprep.subr.bf16.mxu1 %v618_v6  ;;  %v512_v60 = vld [vmem:[%s809_s7] ss:$0 sm:$0xff] }
   0xd   :  { %v296_v7 = vld [vmem:[%s810_s9] sm:$0x3] }
  0x12   :  { %110 = vmatmul.mubr.bf16.vlgmr.msra.gmra.mrb[0].mxu1 %v503_v8  ;;  %541 = vmatpush3.bf16.xpose.msra.mxu0 %v395_v36  ;;  %v304_v8 = vsub.s32 1, %v299_v5 }
  0x13   :  { %557 = vmatpush3.bf16.xpose.msra.mxu1 %v138_v9  ;;  %558 = vmatprep.mubr.msk.bf16.mxu1 %vm619_vm1, %v618_v6 }
  0x14   :  { %562 = vmatprep.subr.bf16.mxu1 %v618_v6  ;;  %572 = vmatprep.subr.msk.bf16.mxu0 %vm133_vm0, %v596_v37 }
  0x1a   :  { %543 = vmatpush3.bf16.xpose.msra.mxu0 %v398_v39 }
  0x1b   :  { %573 = vmatprep.subr.msk.bf16.mxu0 %vm133_vm0, %v598_v40 }
  0x22   :  { %545 = vmatpush3.bf16.xpose.msra.mxu0 %v401_v42 }
  0x23   :  { %574 = vmatprep.subr.msk.bf16.mxu0 %vm133_vm0, %v600_v43 }
  0x2a   :  { %547 = vmatpush3.bf16.xpose.msra.mxu0 %v404_v45 }
  0x2b   :  { %575 = vmatprep.subr.msk.bf16.mxu0 %vm133_vm0, %v602_v46 }
  0x32   :  { %549 = vmatpush3.bf16.xpose.msra.mxu0 %v407_v48 }
  0x33   :  { %576 = vmatprep.subr.msk.bf16.mxu0 %vm133_vm0, %v604_v49 }
  0x3a   :  { %551 = vmatpush3.bf16.xpose.msra.mxu0 %v410_v51 }
  0x3b   :  { %577 = vmatprep.subr.msk.bf16.mxu0 %vm133_vm0, %v606_v57 }
  0x42   :  { %553 = vmatpush3.bf16.xpose.msra.mxu0 %v413_v59 }
  0xe5   :  { %v111_v11 = vpop.f32.mrb[0].mxu1 }
  0xe6   :  { %v112_v12 = vadd.f32 %v502_v10, %v111_v11  ;;  %v113_v13 = vpop.f32.mrb[1].mxu1  ;;  %v305_v10 = vrot.slane %v296_v7, %v304_v8 }
  0xe7   :  { %v114_v14 = vpop.f32.mrb[2].mxu1 }
  0xe8   :  { %v117_v15 = vmax.f32 %v112_v12, 0.0  ;;  %v115_v16 = vpop.f32.mrb[3].mxu1 }
  0xea   :  { %v118_v17 = vpack.c.bf16 %v117_v15, %v117_v15 }
  0xec   :  { %559 = vmatmul.mubr.msk.bf16.vlgmr.msra.gmra.mrb[4].mxu1 %vm133_vm0, %v118_v17 }
  0xed   :  { %566 = vmatprep.mubr.msk.bf16.mxu1 %vm619_vm1, %v618_v6  ;;  %563 = vmatpush3.bf16.xpose.msra.mxu1 %v217_v19 }
  0xee   :  { %564 = vmatprep.subr.bf16.mxu1 %v618_v6  ;;  %v300_v6 = vsub.s32 0, %v299_v5 }
  0xf0   :  { %v301_v9 = vrot.slane %v296_v7, %v300_v6 }
  0xf5   :  { %565 = vmatpush3.bf16.xpose.msra.mxu1 %v220_v28 }
 0x1bf   :  { %v174_v21 = vpop.f32.mrb[4].mxu1 }
 0x1c0   :  { %v175_v22 = vadd.f32 %v509_v20, %v174_v21  ;;  %v560_v23 = vpop.f32.mrb[5].mxu1 }
 0x1c1   :  { %v177_v25 = vpop.f32.mrb[6].mxu1 }
 0x1c2   :  { %v180_v26 = vmul.f32 0.5, %v175_v22  ;;  %493 = vst.msk [vmem:[%s806_s11] sm:$0xff] %vm492_vm3, %v175_v22  ;;  %v561_v27 = vpop.f32.mrb[7].mxu1 }
 0x1c4   :  { %v181_v29 = vmul.f32 1.442695, %v180_v26 }
 0x1c6   :  { %608 = vpow2.f32 %v181_v29 }
 0x1d0   :  { %v609_v34 = vpop.eup %608 }
 0x1d1   :  { %185 = vrot.lane.b32.xlu0 %v609_v34, %s620_s21 }
 0x243   :  { %v186_v53 = vpop.permute.xlu0 %185 }
 0x244   :  { %v188_v54 = vmul.f32 %v186_v53, %v183_v52 }
 0x246   :  { %v189_v55 = vadd.f32 %v188_v54, %v175_v22 }
 0x248   :  { %v190_v56 = vpack.c.bf16 %v189_v55, %v189_v55 }
 0x24a   :  { %567 = vmatmul.mubr.msk.bf16.vlgmr.msra.gmra.mrb[8].mxu1 %vm212_vm2, %v190_v56 }
 0x31d   :  { %v256_v61 = vpop.f32.mrb[8].mxu1 }
 0x31e   :  { %v257_v62 = vadd.f32 %v512_v60, %v256_v61  ;;  %v568_v63 = vpop.f32.mrb[9].mxu1 }
 0x31f   :  { %v259_v0 = vpop.f32.mrb[10].mxu1 }
 0x320   :  { %v262_v1 = vmax.f32 %v257_v62, 0.0  ;;  %v569_v2 = vpop.f32.mrb[11].mxu1 }
 0x322   :  { %v263_v3 = vpack.c.bf16 %v262_v1, %v262_v1 }
 0x324   :  { %554 = vmatprep.mubr.msk.bf16.mxu0 %vm133_vm0, %v263_v3 }
 0x325   :  { %555 = vmatmul.mubr.msk.bf16.vlgmr.msra.gmra.mrb[0].mxu0 %vm133_vm0, %v263_v3 }
 0x3f8   :  { %v473_v11 = vpop.f32.mrb[0].mxu0 }
 0x3f9   :  { %v474_v12 = vadd.f32 %v473_v11, %v301_v9  ;;  %v475_v13 = vpop.f32.mrb[1].mxu0 }
 0x3fa   :  { %v476_v14 = vadd.f32 %v475_v13, %v305_v10  ;;  %v477_v15 = vpop.f32.mrb[2].mxu0 }
 0x3fb   :  { %v480_v16 = vsub.f32 0.0, %v474_v12  ;;  %v478_v17 = vpop.f32.mrb[3].mxu0 }
 0x3fc   :  { %v481_v18 = vsub.f32 0.0, %v476_v14 }
 0x3fd   :  { %v482_v19 = vmul.f32 1.442695, %v480_v16 }
 0x3fe   :  { %v484_v20 = vmul.f32 1.442695, %v481_v18 }
 0x3ff   :  { %610 = vpow2.f32 %v482_v19 }
 0x400   :  { %612 = vpow2.f32 %v484_v20 }
 0x409   :  { %v611_v21 = vpop.eup %610 }
 0x40a   :  { %v613_v22 = vpop.eup %612  ;;  %v486_v23 = vadd.f32 1.0, %v611_v21 }
 0x40b   :  { %v487_v24 = vadd.f32 1.0, %v613_v22 }
 0x40c   :  { %614 = vrcp.f32 %v486_v23 }
 0x40d   :  { %616 = vrcp.f32 %v487_v24 }
 0x416   :  { %v615_v25 = vpop.eup %614 }
 0x417   :  { %v617_v26 = vpop.eup %616  ;;  %490 = vst [vmem:[%s811_s10] sm:$0xff] %v615_v25 }
 0x418   :  { %491 = vst [vmem:[%s811_s10 + $0x8] sm:$0xff] %v617_v26 }

</bundles_post_ra>
